<compile_context>
chip_gen: v6e
topology: v6e:2x2x1
jax: 0.10.0
libtpu: 0.0.40
codegen_flags: <defaults>
</compile_context>

<pallas_src>
import functools
import math

import jax
import jax.numpy as jnp
from jax.experimental import pallas as pl
from jax.experimental.pallas import tpu as pltpu

_LN_EPS = 1e-12


def _layernorm(x, gamma, beta):
    mu = jnp.mean(x, axis=-1, keepdims=True)
    xc = x - mu
    var = jnp.mean(xc * xc, axis=-1, keepdims=True)
    return xc * jax.lax.rsqrt(var + _LN_EPS) * gamma + beta


def _encoder_layer_kernel(x_ref, wqkv_ref, bqkv_ref, woh_ref, bo_ref,
                          g1_ref, be1_ref, w1_ref, b1_ref, w2_ref, b2_ref,
                          g2_ref, be2_ref, o_ref, *, n_heads):
    bf16 = jnp.bfloat16
    x = x_ref[0]                                    # (S, H) f32, current batch element
    S, H = x.shape
    d = H // n_heads
    scale = 1.0 / math.sqrt(d)

    # Fused QKV projection: bf16 operands, f32 accumulation on the MXU.
    qkv = jnp.dot(x.astype(bf16), wqkv_ref[...],
                  preferred_element_type=jnp.float32) + bqkv_ref[...]    # (S, 3H) f32

    def heads(base):
        # Regroup columns [base + h*d : base + (h+1)*d] into a leading head axis.
        return jnp.stack([qkv[:, base + h * d: base + (h + 1) * d]
                          for h in range(n_heads)], axis=0)              # (nh, S, d)

    qh = heads(0) * scale            # scale folded onto q instead of the (S,S) scores
    kh = heads(H)
    vh = heads(2 * H)

    # Head-batched scores: (nh, S, d) x (nh, S, d) -> (nh, S, S).
    s = jax.lax.dot_general(qh.astype(bf16), kh.astype(bf16),
                            (((2,), (2,)), ((0,), (0,))),
                            preferred_element_type=jnp.float32)
    s = s - jnp.max(s, axis=-1, keepdims=True)
    e = jnp.exp(s)
    # Exact divide keeps the 1e-3 validation tight; pl.reciprocal(denom, approx=True)
    # would offload this to the otherwise-idle EUP at production S.
    p = e / jnp.sum(e, axis=-1, keepdims=True)

    # Head-batched weighted values: (nh, S, S) x (nh, S, d) -> (nh, S, d).
    wv = jax.lax.dot_general(p.astype(bf16), vh.astype(bf16),
                             (((2,), (1,)), ((0,), (0,))),
                             preferred_element_type=jnp.float32)

    # Output projection: accumulate per-head contributions against row-slices of W_o
    # (woh_ref is (nh, d, H)); avoids the cross-lane concat of heads.
    woh = woh_ref[...]
    mha = jnp.zeros((S, H), jnp.float32)
    for h in range(n_heads):
        mha = mha + jnp.dot(wv[h].astype(bf16), woh[h],
                            preferred_element_type=jnp.float32)
    mha = mha + bo_ref[...]

    y1 = _layernorm(mha + x, g1_ref[...], be1_ref[...])

    # Feed-forward: gelu_erf(y1 @ W1 + b1) @ W2 + b2, residual + LayerNorm.
    h1 = jnp.dot(y1.astype(bf16), w1_ref[...],
                 preferred_element_type=jnp.float32) + b1_ref[...]
    h1 = h1 * 0.5 * (1.0 + jax.lax.erf(h1 * (1.0 / math.sqrt(2.0))))
    ff = jnp.dot(h1.astype(bf16), w2_ref[...],
                 preferred_element_type=jnp.float32) + b2_ref[...]
    y2 = _layernorm(ff + y1, g2_ref[...], be2_ref[...])

    o_ref[0] = y2.astype(o_ref.dtype)


@functools.partial(jax.jit, static_argnames=("n_heads",))
def transformer_encoder_layer(x, params, n_heads):
    """x: (B, S, H) f32; params in PyTorch layout:
       (wq,bq, wk,bk, wv,bv, wo,bo, ln1_g,ln1_b, w1,b1, w2,b2, ln2_g,ln2_b),
       where every Linear W is (out, in)."""
    (wq, bq, wk, bk, wv, bv, wo, bo, g1, be1, w1, b1, w2, b2, g2, be2) = params
    B, S, H = x.shape
    F = w1.shape[0]
    assert H % n_heads == 0
    d = H // n_heads
    bf16 = jnp.bfloat16

    # Wrapper-side weight prep: transpose to (in, out), fuse QKV, regroup W_o by head,
    # cast matmul weights to bf16 (accumulation stays f32 in-kernel); biases/LN stay f32.
    wqkv = jnp.concatenate([wq.T, wk.T, wv.T], axis=1).astype(bf16)        # (H, 3H)
    bqkv = jnp.concatenate([bq, bk, bv]).reshape(1, 3 * H)
    woh = wo.T.reshape(n_heads, d, H).astype(bf16)                          # (nh, d, H)
    kparams = (
        wqkv, bqkv, woh, bo.reshape(1, H),
        g1.reshape(1, H), be1.reshape(1, H),
        w1.T.astype(bf16), b1.reshape(1, F),
        w2.T.astype(bf16), b2.reshape(1, H),
        g2.reshape(1, H), be2.reshape(1, H),
    )

    def resident(shape):
        # Constant block index across the batch grid -> weight stays VMEM-resident.
        # (On v7x at production H/F: single-buffer via pipeline_mode=pl.Buffered(1)
        #  and tile/stream the FFN weights instead of keeping them fully resident.)
        n = len(shape)
        return pl.BlockSpec(shape, lambda b: (0,) * n)

    in_specs = [pl.BlockSpec((1, S, H), lambda b: (b, 0, 0))]
    in_specs += [resident(tuple(p.shape)) for p in kparams]
    out_spec = pl.BlockSpec((1, S, H), lambda b: (b, 0, 0))

    flops = B * (8 * S * H * H + 4 * S * S * H + 4 * S * H * F)
    transcendentals = B * (n_heads * S * S + S * F + 2 * S)
    # Weights counted once: valid while the constant-index-map residency holds.
    bytes_accessed = 2 * B * S * H * x.dtype.itemsize + sum(
        int(p.size) * p.dtype.itemsize for p in kparams)

    return pl.pallas_call(
        functools.partial(_encoder_layer_kernel, n_heads=n_heads),
        out_shape=jax.ShapeDtypeStruct((B, S, H), x.dtype),
        grid=(B,),
        in_specs=in_specs,
        out_specs=out_spec,
        compiler_params=pltpu.CompilerParams(
            dimension_semantics=("parallel",),      # megacore sharding on v7x
            vmem_limit_bytes=32 * 1024 * 1024,      # raise toward 128 MiB on v5e/v6e at production H/F
        ),
        cost_estimate=pl.CostEstimate(flops=flops,
                                      transcendentals=transcendentals,
                                      bytes_accessed=bytes_accessed),
    )(x, *kparams)


def _reference(x, params, n_heads):
    """Pure-JAX reference mirroring the PyTorch forward (eval mode) with the same
    bf16-operand / f32-accumulation matmul policy as the kernel."""
    (wq, bq, wk, bk, wv, bv, wo, bo, g1, be1, w1, b1, w2, b2, g2, be2) = params
    B, S, H = x.shape
    d = H // n_heads
    bf16 = jnp.bfloat16

    def lin(t, w, b):
        return jnp.dot(t.astype(bf16), w.T.astype(bf16),
                       preferred_element_type=jnp.float32) + b

    def ln(t, g, b):
        mu = jnp.mean(t, axis=-1, keepdims=True)
        xc = t - mu
        var = jnp.mean(xc * xc, axis=-1, keepdims=True)
        return xc * jax.lax.rsqrt(var + _LN_EPS) * g + b

    q = lin(x, wq, bq).reshape(B, S, n_heads, d).transpose(0, 2, 1, 3) * (1.0 / math.sqrt(d))
    k = lin(x, wk, bk).reshape(B, S, n_heads, d).transpose(0, 2, 1, 3)
    v = lin(x, wv, bv).reshape(B, S, n_heads, d).transpose(0, 2, 1, 3)
    s = jnp.einsum("bhqd,bhkd->bhqk", q.astype(bf16), k.astype(bf16),
                   preferred_element_type=jnp.float32)
    p = jax.nn.softmax(s, axis=-1)
    wv_out = jnp.einsum("bhqk,bhkd->bhqd", p.astype(bf16), v.astype(bf16),
                        preferred_element_type=jnp.float32)
    wv_out = wv_out.transpose(0, 2, 1, 3).reshape(B, S, H)
    y1 = ln(lin(wv_out, wo, bo) + x, g1, be1)
    h1 = lin(y1, w1, b1)
    h1 = h1 * 0.5 * (1.0 + jax.lax.erf(h1 * (1.0 / math.sqrt(2.0))))
    y2 = ln(lin(h1, w2, b2) + y1, g2, be2)
    return y2


if __name__ == "__main__":
    B, S, H, NH, FF = 2, 8, 32, 4, 64   # batch, n_patches, hidden, heads, feedforward
    key = jax.random.PRNGKey(0)
    kx, kp = jax.random.split(key)

    x = jax.random.normal(kx, (B, S, H), dtype=jnp.float32)

    keys = iter(jax.random.split(kp, 24))

    def linear_init(out_dim, in_dim):
        bound = 1.0 / math.sqrt(in_dim)
        w = jax.random.uniform(next(keys), (out_dim, in_dim), jnp.float32, -bound, bound)
        b = jax.random.uniform(next(keys), (out_dim,), jnp.float32, -bound, bound)
        return w, b

    wq, bq = linear_init(H, H)
    wk, bk = linear_init(H, H)
    wv, bv = linear_init(H, H)
    wo, bo = linear_init(H, H)
    w1, b1 = linear_init(FF, H)
    w2, b2 = linear_init(H, FF)
    g1 = 1.0 + 0.1 * jax.random.normal(next(keys), (H,), jnp.float32)
    be1 = 0.1 * jax.random.normal(next(keys), (H,), jnp.float32)
    g2 = 1.0 + 0.1 * jax.random.normal(next(keys), (H,), jnp.float32)
    be2 = 0.1 * jax.random.normal(next(keys), (H,), jnp.float32)

    params = (wq, bq, wk, bk, wv, bv, wo, bo, g1, be1, w1, b1, w2, b2, g2, be2)

    out = transformer_encoder_layer(x, params, n_heads=NH)
    jax.block_until_ready(out)

    ref = _reference(x, params, NH)
    assert out.shape == (B, S, H)
    max_err = float(jnp.max(jnp.abs(out - ref)))
    assert jnp.allclose(out, ref, atol=1e-3, rtol=1e-3), max_err

    print("KERNEL_OK")
</pallas_src>

<mosaic_0001>
module attributes {stable_mosaic.version = 11 : i64} {
  func.func @_encoder_layer_kernel(%arg0: i32, %arg1: memref<1x8x32xf32, #tpu.memory_space<vmem>>, %arg2: memref<32x96xbf16, #tpu.memory_space<vmem>>, %arg3: memref<1x96xf32, #tpu.memory_space<vmem>>, %arg4: memref<4x8x32xbf16, #tpu.memory_space<vmem>>, %arg5: memref<1x32xf32, #tpu.memory_space<vmem>>, %arg6: memref<1x32xf32, #tpu.memory_space<vmem>>, %arg7: memref<1x32xf32, #tpu.memory_space<vmem>>, %arg8: memref<32x64xbf16, #tpu.memory_space<vmem>>, %arg9: memref<1x64xf32, #tpu.memory_space<vmem>>, %arg10: memref<64x32xbf16, #tpu.memory_space<vmem>>, %arg11: memref<1x32xf32, #tpu.memory_space<vmem>>, %arg12: memref<1x32xf32, #tpu.memory_space<vmem>>, %arg13: memref<1x32xf32, #tpu.memory_space<vmem>>, %arg14: memref<1x8x32xf32, #tpu.memory_space<vmem>>) attributes {dimension_semantics = [#tpu.dimension_semantics<parallel>], iteration_bounds = array<i64: 2>, scalar_prefetch = 0 : i64, scratch_operands = 0 : i64, tpu.core_type = #tpu.core_type<tc>, window_params = [{transform_indices = @transform_0, window_bounds = array<i64: 1, 8, 32>}, {pipeline_mode = #tpu.pipeline_mode<synchronous>, transform_indices = @transform_1, window_bounds = array<i64: 32, 96>}, {pipeline_mode = #tpu.pipeline_mode<synchronous>, transform_indices = @transform_2, window_bounds = array<i64: 1, 96>}, {pipeline_mode = #tpu.pipeline_mode<synchronous>, transform_indices = @transform_3, window_bounds = array<i64: 4, 8, 32>}, {pipeline_mode = #tpu.pipeline_mode<synchronous>, transform_indices = @transform_4, window_bounds = array<i64: 1, 32>}, {pipeline_mode = #tpu.pipeline_mode<synchronous>, transform_indices = @transform_5, window_bounds = array<i64: 1, 32>}, {pipeline_mode = #tpu.pipeline_mode<synchronous>, transform_indices = @transform_6, window_bounds = array<i64: 1, 32>}, {pipeline_mode = #tpu.pipeline_mode<synchronous>, transform_indices = @transform_7, window_bounds = array<i64: 32, 64>}, {pipeline_mode = #tpu.pipeline_mode<synchronous>, transform_indices = @transform_8, window_bounds = array<i64: 1, 64>}, {pipeline_mode = #tpu.pipeline_mode<synchronous>, transform_indices = @transform_9, window_bounds = array<i64: 64, 32>}, {pipeline_mode = #tpu.pipeline_mode<synchronous>, transform_indices = @transform_10, window_bounds = array<i64: 1, 32>}, {pipeline_mode = #tpu.pipeline_mode<synchronous>, transform_indices = @transform_11, window_bounds = array<i64: 1, 32>}, {pipeline_mode = #tpu.pipeline_mode<synchronous>, transform_indices = @transform_12, window_bounds = array<i64: 1, 32>}, {transform_indices = @transform_13, window_bounds = array<i64: 1, 8, 32>}]} {
    %c0 = arith.constant 0 : index
    %c0_0 = arith.constant 0 : index
    %c0_1 = arith.constant 0 : index
    %0 = vector.load %arg1[%c0, %c0_0, %c0_1] : memref<1x8x32xf32, #tpu.memory_space<vmem>>, vector<1x8x32xf32>
    %1 = vector.shape_cast %0 : vector<1x8x32xf32> to vector<8x32xf32>
    %2 = arith.truncf %1 : vector<8x32xf32> to vector<8x32xbf16>
    %c0_2 = arith.constant 0 : index
    %c0_3 = arith.constant 0 : index
    %3 = vector.load %arg2[%c0_2, %c0_3] : memref<32x96xbf16, #tpu.memory_space<vmem>>, vector<32x96xbf16>
    %cst = arith.constant dense<0.000000e+00> : vector<8x96xf32>
    %4 = tpu.matmul %2, %3, %cst {dimension_numbers = #tpu.dot_dimension_numbers<[1], [0], [0], [1], [0, 0, 1, 1], [], []>} : vector<8x32xbf16>, vector<32x96xbf16>, vector<8x96xf32> -> vector<8x96xf32>
    %c0_4 = arith.constant 0 : index
    %c0_5 = arith.constant 0 : index
    %5 = vector.load %arg3[%c0_4, %c0_5] : memref<1x96xf32, #tpu.memory_space<vmem>>, vector<1x96xf32>
    %6 = vector.broadcast %5 : vector<1x96xf32> to vector<8x96xf32>
    %7 = arith.addf %4, %6 : vector<8x96xf32>
    %8 = vector.extract_strided_slice %7 {offsets = [0, 0], sizes = [8, 8], strides = [1, 1]} : vector<8x96xf32> to vector<8x8xf32>
    %9 = vector.extract_strided_slice %7 {offsets = [0, 8], sizes = [8, 8], strides = [1, 1]} : vector<8x96xf32> to vector<8x8xf32>
    %10 = vector.extract_strided_slice %7 {offsets = [0, 16], sizes = [8, 8], strides = [1, 1]} : vector<8x96xf32> to vector<8x8xf32>
    %11 = vector.extract_strided_slice %7 {offsets = [0, 24], sizes = [8, 8], strides = [1, 1]} : vector<8x96xf32> to vector<8x8xf32>
    %12 = vector.shape_cast %8 : vector<8x8xf32> to vector<1x8x8xf32>
    %13 = vector.shape_cast %9 : vector<8x8xf32> to vector<1x8x8xf32>
    %14 = vector.shape_cast %10 : vector<8x8xf32> to vector<1x8x8xf32>
    %15 = vector.shape_cast %11 : vector<8x8xf32> to vector<1x8x8xf32>
    %16 = tpu.concatenate %12, %13, %14, %15 in 0 : vector<1x8x8xf32>, vector<1x8x8xf32>, vector<1x8x8xf32>, vector<1x8x8xf32> -> vector<4x8x8xf32>
    %cst_6 = arith.constant 0.353553385 : f32
    %17 = vector.broadcast %cst_6 : f32 to vector<4x8x8xf32>
    %18 = arith.mulf %16, %17 : vector<4x8x8xf32>
    %19 = vector.extract_strided_slice %7 {offsets = [0, 32], sizes = [8, 8], strides = [1, 1]} : vector<8x96xf32> to vector<8x8xf32>
    %20 = vector.extract_strided_slice %7 {offsets = [0, 40], sizes = [8, 8], strides = [1, 1]} : vector<8x96xf32> to vector<8x8xf32>
    %21 = vector.extract_strided_slice %7 {offsets = [0, 48], sizes = [8, 8], strides = [1, 1]} : vector<8x96xf32> to vector<8x8xf32>
    %22 = vector.extract_strided_slice %7 {offsets = [0, 56], sizes = [8, 8], strides = [1, 1]} : vector<8x96xf32> to vector<8x8xf32>
    %23 = vector.shape_cast %19 : vector<8x8xf32> to vector<1x8x8xf32>
    %24 = vector.shape_cast %20 : vector<8x8xf32> to vector<1x8x8xf32>
    %25 = vector.shape_cast %21 : vector<8x8xf32> to vector<1x8x8xf32>
    %26 = vector.shape_cast %22 : vector<8x8xf32> to vector<1x8x8xf32>
    %27 = tpu.concatenate %23, %24, %25, %26 in 0 : vector<1x8x8xf32>, vector<1x8x8xf32>, vector<1x8x8xf32>, vector<1x8x8xf32> -> vector<4x8x8xf32>
    %28 = vector.extract_strided_slice %7 {offsets = [0, 64], sizes = [8, 8], strides = [1, 1]} : vector<8x96xf32> to vector<8x8xf32>
    %29 = vector.extract_strided_slice %7 {offsets = [0, 72], sizes = [8, 8], strides = [1, 1]} : vector<8x96xf32> to vector<8x8xf32>
    %30 = vector.extract_strided_slice %7 {offsets = [0, 80], sizes = [8, 8], strides = [1, 1]} : vector<8x96xf32> to vector<8x8xf32>
    %31 = vector.extract_strided_slice %7 {offsets = [0, 88], sizes = [8, 8], strides = [1, 1]} : vector<8x96xf32> to vector<8x8xf32>
    %32 = vector.shape_cast %28 : vector<8x8xf32> to vector<1x8x8xf32>
    %33 = vector.shape_cast %29 : vector<8x8xf32> to vector<1x8x8xf32>
    %34 = vector.shape_cast %30 : vector<8x8xf32> to vector<1x8x8xf32>
    %35 = vector.shape_cast %31 : vector<8x8xf32> to vector<1x8x8xf32>
    %36 = tpu.concatenate %32, %33, %34, %35 in 0 : vector<1x8x8xf32>, vector<1x8x8xf32>, vector<1x8x8xf32>, vector<1x8x8xf32> -> vector<4x8x8xf32>
    %37 = arith.truncf %18 : vector<4x8x8xf32> to vector<4x8x8xbf16>
    %38 = arith.truncf %27 : vector<4x8x8xf32> to vector<4x8x8xbf16>
    %cst_7 = arith.constant dense<0.000000e+00> : vector<4x8x8xf32>
    %39 = tpu.matmul %37, %38, %cst_7 {dimension_numbers = #tpu.dot_dimension_numbers<[2], [2], [1], [1], [0, 0, 0, 1, 1, 1], [0], [0]>} : vector<4x8x8xbf16>, vector<4x8x8xbf16>, vector<4x8x8xf32> -> vector<4x8x8xf32>
    %cst_8 = arith.constant dense<0xFF800000> : vector<4x8xf32>
    %40 = vector.multi_reduction <maximumf>, %39, %cst_8 [2] : vector<4x8x8xf32> to vector<4x8xf32>
    %41 = vector.shape_cast %40 : vector<4x8xf32> to vector<4x8x1xf32>
    %42 = vector.broadcast %41 : vector<4x8x1xf32> to vector<4x8x8xf32>
    %43 = arith.subf %39, %42 : vector<4x8x8xf32>
    %44 = math.exp %43 : vector<4x8x8xf32>
    %cst_9 = arith.constant dense<0.000000e+00> : vector<4x8xf32>
    %45 = vector.multi_reduction <add>, %44, %cst_9 [2] : vector<4x8x8xf32> to vector<4x8xf32>
    %46 = vector.shape_cast %45 : vector<4x8xf32> to vector<4x8x1xf32>
    %47 = vector.broadcast %46 : vector<4x8x1xf32> to vector<4x8x8xf32>
    %48 = arith.divf %44, %47 : vector<4x8x8xf32>
    %49 = arith.truncf %48 : vector<4x8x8xf32> to vector<4x8x8xbf16>
    %50 = arith.truncf %36 : vector<4x8x8xf32> to vector<4x8x8xbf16>
    %cst_10 = arith.constant dense<0.000000e+00> : vector<4x8x8xf32>
    %51 = tpu.matmul %49, %50, %cst_10 {dimension_numbers = #tpu.dot_dimension_numbers<[2], [1], [1], [2], [0, 0, 0, 1, 1, 2], [0], [0]>} : vector<4x8x8xbf16>, vector<4x8x8xbf16>, vector<4x8x8xf32> -> vector<4x8x8xf32>
    %c0_11 = arith.constant 0 : index
    %c0_12 = arith.constant 0 : index
    %c0_13 = arith.constant 0 : index
    %52 = vector.load %arg4[%c0_11, %c0_12, %c0_13] : memref<4x8x32xbf16, #tpu.memory_space<vmem>>, vector<4x8x32xbf16>
    %cst_14 = arith.constant 0.000000e+00 : f32
    %53 = vector.broadcast %cst_14 : f32 to vector<8x32xf32>
    %54 = vector.extract_strided_slice %51 {offsets = [0, 0, 0], sizes = [1, 8, 8], strides = [1, 1, 1]} : vector<4x8x8xf32> to vector<1x8x8xf32>
    %55 = vector.shape_cast %54 : vector<1x8x8xf32> to vector<8x8xf32>
    %56 = arith.truncf %55 : vector<8x8xf32> to vector<8x8xbf16>
    %57 = vector.extract_strided_slice %52 {offsets = [0, 0, 0], sizes = [1, 8, 32], strides = [1, 1, 1]} : vector<4x8x32xbf16> to vector<1x8x32xbf16>
    %58 = vector.shape_cast %57 : vector<1x8x32xbf16> to vector<8x32xbf16>
    %cst_15 = arith.constant dense<0.000000e+00> : vector<8x32xf32>
    %59 = tpu.matmul %56, %58, %cst_15 {dimension_numbers = #tpu.dot_dimension_numbers<[1], [0], [0], [1], [0, 0, 1, 1], [], []>} : vector<8x8xbf16>, vector<8x32xbf16>, vector<8x32xf32> -> vector<8x32xf32>
    %60 = arith.addf %53, %59 : vector<8x32xf32>
    %61 = vector.extract_strided_slice %51 {offsets = [1, 0, 0], sizes = [1, 8, 8], strides = [1, 1, 1]} : vector<4x8x8xf32> to vector<1x8x8xf32>
    %62 = vector.shape_cast %61 : vector<1x8x8xf32> to vector<8x8xf32>
    %63 = arith.truncf %62 : vector<8x8xf32> to vector<8x8xbf16>
    %64 = vector.extract_strided_slice %52 {offsets = [1, 0, 0], sizes = [1, 8, 32], strides = [1, 1, 1]} : vector<4x8x32xbf16> to vector<1x8x32xbf16>
    %65 = vector.shape_cast %64 : vector<1x8x32xbf16> to vector<8x32xbf16>
    %cst_16 = arith.constant dense<0.000000e+00> : vector<8x32xf32>
    %66 = tpu.matmul %63, %65, %cst_16 {dimension_numbers = #tpu.dot_dimension_numbers<[1], [0], [0], [1], [0, 0, 1, 1], [], []>} : vector<8x8xbf16>, vector<8x32xbf16>, vector<8x32xf32> -> vector<8x32xf32>
    %67 = arith.addf %60, %66 : vector<8x32xf32>
    %68 = vector.extract_strided_slice %51 {offsets = [2, 0, 0], sizes = [1, 8, 8], strides = [1, 1, 1]} : vector<4x8x8xf32> to vector<1x8x8xf32>
    %69 = vector.shape_cast %68 : vector<1x8x8xf32> to vector<8x8xf32>
    %70 = arith.truncf %69 : vector<8x8xf32> to vector<8x8xbf16>
    %71 = vector.extract_strided_slice %52 {offsets = [2, 0, 0], sizes = [1, 8, 32], strides = [1, 1, 1]} : vector<4x8x32xbf16> to vector<1x8x32xbf16>
    %72 = vector.shape_cast %71 : vector<1x8x32xbf16> to vector<8x32xbf16>
    %cst_17 = arith.constant dense<0.000000e+00> : vector<8x32xf32>
    %73 = tpu.matmul %70, %72, %cst_17 {dimension_numbers = #tpu.dot_dimension_numbers<[1], [0], [0], [1], [0, 0, 1, 1], [], []>} : vector<8x8xbf16>, vector<8x32xbf16>, vector<8x32xf32> -> vector<8x32xf32>
    %74 = arith.addf %67, %73 : vector<8x32xf32>
    %75 = vector.extract_strided_slice %51 {offsets = [3, 0, 0], sizes = [1, 8, 8], strides = [1, 1, 1]} : vector<4x8x8xf32> to vector<1x8x8xf32>
    %76 = vector.shape_cast %75 : vector<1x8x8xf32> to vector<8x8xf32>
    %77 = arith.truncf %76 : vector<8x8xf32> to vector<8x8xbf16>
    %78 = vector.extract_strided_slice %52 {offsets = [3, 0, 0], sizes = [1, 8, 32], strides = [1, 1, 1]} : vector<4x8x32xbf16> to vector<1x8x32xbf16>
    %79 = vector.shape_cast %78 : vector<1x8x32xbf16> to vector<8x32xbf16>
    %cst_18 = arith.constant dense<0.000000e+00> : vector<8x32xf32>
    %80 = tpu.matmul %77, %79, %cst_18 {dimension_numbers = #tpu.dot_dimension_numbers<[1], [0], [0], [1], [0, 0, 1, 1], [], []>} : vector<8x8xbf16>, vector<8x32xbf16>, vector<8x32xf32> -> vector<8x32xf32>
    %81 = arith.addf %74, %80 : vector<8x32xf32>
    %c0_19 = arith.constant 0 : index
    %c0_20 = arith.constant 0 : index
    %82 = vector.load %arg5[%c0_19, %c0_20] : memref<1x32xf32, #tpu.memory_space<vmem>>, vector<1x32xf32>
    %83 = vector.broadcast %82 : vector<1x32xf32> to vector<8x32xf32>
    %84 = arith.addf %81, %83 : vector<8x32xf32>
    %85 = arith.addf %84, %1 : vector<8x32xf32>
    %c0_21 = arith.constant 0 : index
    %c0_22 = arith.constant 0 : index
    %86 = vector.load %arg6[%c0_21, %c0_22] : memref<1x32xf32, #tpu.memory_space<vmem>>, vector<1x32xf32>
    %c0_23 = arith.constant 0 : index
    %c0_24 = arith.constant 0 : index
    %87 = vector.load %arg7[%c0_23, %c0_24] : memref<1x32xf32, #tpu.memory_space<vmem>>, vector<1x32xf32>
    %cst_25 = arith.constant dense<0.000000e+00> : vector<8xf32>
    %88 = vector.multi_reduction <add>, %85, %cst_25 [1] : vector<8x32xf32> to vector<8xf32>
    %89 = vector.shape_cast %88 : vector<8xf32> to vector<8x1xf32>
    %cst_26 = arith.constant 3.200000e+01 : f32
    %90 = vector.broadcast %cst_26 : f32 to vector<8x1xf32>
    %91 = arith.divf %89, %90 : vector<8x1xf32>
    %92 = vector.broadcast %91 : vector<8x1xf32> to vector<8x32xf32>
    %93 = arith.subf %85, %92 : vector<8x32xf32>
    %94 = arith.mulf %93, %93 : vector<8x32xf32>
    %cst_27 = arith.constant dense<0.000000e+00> : vector<8xf32>
    %95 = vector.multi_reduction <add>, %94, %cst_27 [1] : vector<8x32xf32> to vector<8xf32>
    %96 = vector.shape_cast %95 : vector<8xf32> to vector<8x1xf32>
    %cst_28 = arith.constant 3.200000e+01 : f32
    %97 = vector.broadcast %cst_28 : f32 to vector<8x1xf32>
    %98 = arith.divf %96, %97 : vector<8x1xf32>
    %cst_29 = arith.constant 9.99999996E-13 : f32
    %99 = vector.broadcast %cst_29 : f32 to vector<8x1xf32>
    %100 = arith.addf %98, %99 : vector<8x1xf32>
    %101 = math.rsqrt %100 : vector<8x1xf32>
    %102 = vector.broadcast %101 : vector<8x1xf32> to vector<8x32xf32>
    %103 = arith.mulf %93, %102 : vector<8x32xf32>
    %104 = vector.broadcast %86 : vector<1x32xf32> to vector<8x32xf32>
    %105 = arith.mulf %103, %104 : vector<8x32xf32>
    %106 = vector.broadcast %87 : vector<1x32xf32> to vector<8x32xf32>
    %107 = arith.addf %105, %106 : vector<8x32xf32>
    %108 = arith.truncf %107 : vector<8x32xf32> to vector<8x32xbf16>
    %c0_30 = arith.constant 0 : index
    %c0_31 = arith.constant 0 : index
    %109 = vector.load %arg8[%c0_30, %c0_31] : memref<32x64xbf16, #tpu.memory_space<vmem>>, vector<32x64xbf16>
    %cst_32 = arith.constant dense<0.000000e+00> : vector<8x64xf32>
    %110 = tpu.matmul %108, %109, %cst_32 {dimension_numbers = #tpu.dot_dimension_numbers<[1], [0], [0], [1], [0, 0, 1, 1], [], []>} : vector<8x32xbf16>, vector<32x64xbf16>, vector<8x64xf32> -> vector<8x64xf32>
    %c0_33 = arith.constant 0 : index
    %c0_34 = arith.constant 0 : index
    %111 = vector.load %arg9[%c0_33, %c0_34] : memref<1x64xf32, #tpu.memory_space<vmem>>, vector<1x64xf32>
    %112 = vector.broadcast %111 : vector<1x64xf32> to vector<8x64xf32>
    %113 = arith.addf %110, %112 : vector<8x64xf32>
    %cst_35 = arith.constant 5.000000e-01 : f32
    %114 = vector.broadcast %cst_35 : f32 to vector<8x64xf32>
    %115 = arith.mulf %113, %114 : vector<8x64xf32>
    %cst_36 = arith.constant 0.707106769 : f32
    %116 = vector.broadcast %cst_36 : f32 to vector<8x64xf32>
    %117 = arith.mulf %113, %116 : vector<8x64xf32>
    %118 = math.erf %117 : vector<8x64xf32>
    %cst_37 = arith.constant 1.000000e+00 : f32
    %119 = vector.broadcast %cst_37 : f32 to vector<8x64xf32>
    %120 = arith.addf %119, %118 : vector<8x64xf32>
    %121 = arith.mulf %115, %120 : vector<8x64xf32>
    %122 = arith.truncf %121 : vector<8x64xf32> to vector<8x64xbf16>
    %c0_38 = arith.constant 0 : index
    %c0_39 = arith.constant 0 : index
    %123 = vector.load %arg10[%c0_38, %c0_39] : memref<64x32xbf16, #tpu.memory_space<vmem>>, vector<64x32xbf16>
    %cst_40 = arith.constant dense<0.000000e+00> : vector<8x32xf32>
    %124 = tpu.matmul %122, %123, %cst_40 {dimension_numbers = #tpu.dot_dimension_numbers<[1], [0], [0], [1], [0, 0, 1, 1], [], []>} : vector<8x64xbf16>, vector<64x32xbf16>, vector<8x32xf32> -> vector<8x32xf32>
    %c0_41 = arith.constant 0 : index
    %c0_42 = arith.constant 0 : index
    %125 = vector.load %arg11[%c0_41, %c0_42] : memref<1x32xf32, #tpu.memory_space<vmem>>, vector<1x32xf32>
    %126 = vector.broadcast %125 : vector<1x32xf32> to vector<8x32xf32>
    %127 = arith.addf %124, %126 : vector<8x32xf32>
    %128 = arith.addf %127, %107 : vector<8x32xf32>
    %c0_43 = arith.constant 0 : index
    %c0_44 = arith.constant 0 : index
    %129 = vector.load %arg12[%c0_43, %c0_44] : memref<1x32xf32, #tpu.memory_space<vmem>>, vector<1x32xf32>
    %c0_45 = arith.constant 0 : index
    %c0_46 = arith.constant 0 : index
    %130 = vector.load %arg13[%c0_45, %c0_46] : memref<1x32xf32, #tpu.memory_space<vmem>>, vector<1x32xf32>
    %cst_47 = arith.constant dense<0.000000e+00> : vector<8xf32>
    %131 = vector.multi_reduction <add>, %128, %cst_47 [1] : vector<8x32xf32> to vector<8xf32>
    %132 = vector.shape_cast %131 : vector<8xf32> to vector<8x1xf32>
    %cst_48 = arith.constant 3.200000e+01 : f32
    %133 = vector.broadcast %cst_48 : f32 to vector<8x1xf32>
    %134 = arith.divf %132, %133 : vector<8x1xf32>
    %135 = vector.broadcast %134 : vector<8x1xf32> to vector<8x32xf32>
    %136 = arith.subf %128, %135 : vector<8x32xf32>
    %137 = arith.mulf %136, %136 : vector<8x32xf32>
    %cst_49 = arith.constant dense<0.000000e+00> : vector<8xf32>
    %138 = vector.multi_reduction <add>, %137, %cst_49 [1] : vector<8x32xf32> to vector<8xf32>
    %139 = vector.shape_cast %138 : vector<8xf32> to vector<8x1xf32>
    %cst_50 = arith.constant 3.200000e+01 : f32
    %140 = vector.broadcast %cst_50 : f32 to vector<8x1xf32>
    %141 = arith.divf %139, %140 : vector<8x1xf32>
    %cst_51 = arith.constant 9.99999996E-13 : f32
    %142 = vector.broadcast %cst_51 : f32 to vector<8x1xf32>
    %143 = arith.addf %141, %142 : vector<8x1xf32>
    %144 = math.rsqrt %143 : vector<8x1xf32>
    %145 = vector.broadcast %144 : vector<8x1xf32> to vector<8x32xf32>
    %146 = arith.mulf %136, %145 : vector<8x32xf32>
    %147 = vector.broadcast %129 : vector<1x32xf32> to vector<8x32xf32>
    %148 = arith.mulf %146, %147 : vector<8x32xf32>
    %149 = vector.broadcast %130 : vector<1x32xf32> to vector<8x32xf32>
    %150 = arith.addf %148, %149 : vector<8x32xf32>
    %c0_52 = arith.constant 0 : index
    %c0_53 = arith.constant 0 : index
    %c0_54 = arith.constant 0 : index
    %151 = vector.load %arg14[%c0_52, %c0_53, %c0_54] : memref<1x8x32xf32, #tpu.memory_space<vmem>>, vector<1x8x32xf32>
    %152 = vector.shape_cast %151 : vector<1x8x32xf32> to vector<8x32xf32>
    %153 = vector.shape_cast %150 : vector<8x32xf32> to vector<1x8x32xf32>
    tpu.vector_store %arg14[%c0_52, %c0_53, %c0_54], %153 {strides = array<i32>} : memref<1x8x32xf32, #tpu.memory_space<vmem>>, vector<1x8x32xf32>,
    return
  }
  func.func @transform_0(%arg0: i32) -> (i32, i32, i32) {
    %c0_i32 = arith.constant 0 : i32
    %c0_i32_0 = arith.constant 0 : i32
    %c0_i32_1 = arith.constant 0 : i32
    return %arg0, %c0_i32, %c0_i32_0 : i32, i32, i32
  }
  func.func @transform_1(%arg0: i32) -> (i32, i32) {
    %c0_i32 = arith.constant 0 : i32
    %c0_i32_0 = arith.constant 0 : i32
    %c0_i32_1 = arith.constant 0 : i32
    return %c0_i32, %c0_i32_0 : i32, i32
  }
  func.func @transform_2(%arg0: i32) -> (i32, i32) {
    %c0_i32 = arith.constant 0 : i32
    %c0_i32_0 = arith.constant 0 : i32
    %c0_i32_1 = arith.constant 0 : i32
    return %c0_i32, %c0_i32_0 : i32, i32
  }
  func.func @transform_3(%arg0: i32) -> (i32, i32, i32) {
    %c0_i32 = arith.constant 0 : i32
    %c0_i32_0 = arith.constant 0 : i32
    %c0_i32_1 = arith.constant 0 : i32
    %c0_i32_2 = arith.constant 0 : i32
    return %c0_i32, %c0_i32_0, %c0_i32_1 : i32, i32, i32
  }
  func.func @transform_4(%arg0: i32) -> (i32, i32) {
    %c0_i32 = arith.constant 0 : i32
    %c0_i32_0 = arith.constant 0 : i32
    %c0_i32_1 = arith.constant 0 : i32
    return %c0_i32, %c0_i32_0 : i32, i32
  }
  func.func @transform_5(%arg0: i32) -> (i32, i32) {
    %c0_i32 = arith.constant 0 : i32
    %c0_i32_0 = arith.constant 0 : i32
    %c0_i32_1 = arith.constant 0 : i32
    return %c0_i32, %c0_i32_0 : i32, i32
  }
  func.func @transform_6(%arg0: i32) -> (i32, i32) {
    %c0_i32 = arith.constant 0 : i32
    %c0_i32_0 = arith.constant 0 : i32
    %c0_i32_1 = arith.constant 0 : i32
    return %c0_i32, %c0_i32_0 : i32, i32
  }
  func.func @transform_7(%arg0: i32) -> (i32, i32) {
    %c0_i32 = arith.constant 0 : i32
    %c0_i32_0 = arith.constant 0 : i32
    %c0_i32_1 = arith.constant 0 : i32
    return %c0_i32, %c0_i32_0 : i32, i32
  }
  func.func @transform_8(%arg0: i32) -> (i32, i32) {
    %c0_i32 = arith.constant 0 : i32
    %c0_i32_0 = arith.constant 0 : i32
    %c0_i32_1 = arith.constant 0 : i32
    return %c0_i32, %c0_i32_0 : i32, i32
  }
  func.func @transform_9(%arg0: i32) -> (i32, i32) {
    %c0_i32 = arith.constant 0 : i32
    %c0_i32_0 = arith.constant 0 : i32
    %c0_i32_1 = arith.constant 0 : i32
    return %c0_i32, %c0_i32_0 : i32, i32
  }
  func.func @transform_10(%arg0: i32) -> (i32, i32) {
    %c0_i32 = arith.constant 0 : i32
    %c0_i32_0 = arith.constant 0 : i32
    %c0_i32_1 = arith.constant 0 : i32
    return %c0_i32, %c0_i32_0 : i32, i32
  }
  func.func @transform_11(%arg0: i32) -> (i32, i32) {
    %c0_i32 = arith.constant 0 : i32
    %c0_i32_0 = arith.constant 0 : i32
    %c0_i32_1 = arith.constant 0 : i32
    return %c0_i32, %c0_i32_0 : i32, i32
  }
  func.func @transform_12(%arg0: i32) -> (i32, i32) {
    %c0_i32 = arith.constant 0 : i32
    %c0_i32_0 = arith.constant 0 : i32
    %c0_i32_1 = arith.constant 0 : i32
    return %c0_i32, %c0_i32_0 : i32, i32
  }
  func.func @transform_13(%arg0: i32) -> (i32, i32, i32) {
    %c0_i32 = arith.constant 0 : i32
    %c0_i32_0 = arith.constant 0 : i32
    %c0_i32_1 = arith.constant 0 : i32
    return %arg0, %c0_i32, %c0_i32_0 : i32, i32, i32
  }
}

</mosaic_0001>

<bundles_post_ra>
// kernel: transformer_encoder_layer.1
= control target key start
LH: loop header
LB: loop body
LE: loop exit
PB: predicated region body
PF: predicated region fallthrough
CT: control target
= control target key end

     0   :  { %s2112_s0 = inlined_call_operand.vmem [shape: f32[2,8,32], index: 0, kind: input, shape index: {}]   ;;  %s2113_s1 = inlined_call_operand.vmem [shape: bf16[32,96], index: 1, kind: input, shape index: {}]   ;;  %s2114_s2 = inlined_call_operand.vmem [shape: f32[1,96], index: 2, kind: input, shape index: {}]   ;;  %s2115_s3 = inlined_call_operand.vmem [shape: bf16[4,8,32], index: 3, kind: input, shape index: {}]   ;;  %s2116_s4 = inlined_call_operand.vmem [shape: f32[1,32], index: 4, kind: input, shape index: {}]   ;;  %s2117_s5 = inlined_call_operand.vmem [shape: f32[1,32], index: 5, kind: input, shape index: {}]   ;;  %s2118_s6 = inlined_call_operand.vmem [shape: f32[1,32], index: 6, kind: input, shape index: {}]   ;;  %s2119_s7 = inlined_call_operand.vmem [shape: bf16[32,64], index: 7, kind: input, shape index: {}]   ;;  %s2120_s8 = inlined_call_operand.vmem [shape: f32[1,64], index: 8, kind: input, shape index: {}]   ;;  %s2121_s9 = inlined_call_operand.vmem [shape: bf16[64,32], index: 9, kind: input, shape index: {}]   ;;  %s2122_s10 = inlined_call_operand.vmem [shape: f32[1,32], index: 10, kind: input, shape index: {}]   ;;  %s2123_s11 = inlined_call_operand.vmem [shape: f32[1,32], index: 11, kind: input, shape index: {}]   ;;  %s2124_s12 = inlined_call_operand.vmem [shape: f32[1,32], index: 12, kind: input, shape index: {}]   ;;  %s2125_s13 = inlined_call_operand.hbm [shape: f32[2,8,32], index: 13, kind: output, shape index: {}]  }
   0x1   :  { %2126 = sst [smem:[#allocation5_spill]] %s2112_s0 }
   0x2   :  { %2127 = sst [smem:[#allocation6_spill]] %s2113_s1 }
   0x3   :  { %2128 = sst [smem:[#allocation7_spill]] %s2114_s2 }
   0x4   :  { %2129 = sst [smem:[#allocation8_spill]] %s2115_s3 }
   0x5   :  { %2130 = sst [smem:[#allocation9_spill]] %s2116_s4 }
   0x6   :  { %18 = vsyncpa [#allocation3], 0 }
   0x7   :  { %20 = vsyncpa [#allocation3 + $0x1], 0  ;;  %s1851_s25 = smov 0   ;;  %s1853_s26 = smov 0  }
   0x8   :  { %s1855_s27 = smov 0   ;;  %s1857_s28 = smov 0  }
   0x9 LB: > { %s1872_s29 = sadd.s32 4294967295, %s1771_s28   ;;  %s1459_s30 = sadd.s32 4294967294, %s1771_s28   ;;  %s1771_s28 = sphi %s1857_s28, %s2141_s28   ;;  %s1767_s27 = sphi %s1855_s27, %s2140_s27   ;;  %s1763_s26 = sphi %s1853_s26, %s2139_s26   ;;  %s1759_s25 = sphi %s1851_s25, %s2138_s25  }
   0xa   : > { %s1876_s14 = sadd.s32 1, %s1771_s28   ;;  %s311_s15 = sadd.s32 1, %s1767_s27 }
   0xb   : > { %s308_s16 = ssub.s32 %s1771_s28, %s1876_s14  ;;  %p321_p0 = scmp.ne.s32.totalorder %s1767_s27, %s1763_s26 }
   0xc   : > { %p309_p1 = scmp.eq.s32.totalorder %s308_s16, 0  ;;  %p322_p2 = scmp.eq.s32.totalorder %s1872_s29, 1 }
   0xd   : > { %p327_p3 = scmp.ne.s32.totalorder %s1763_s26, %s1759_s25  ;;  %p328_p4 = scmp.eq.s32.totalorder %s1459_s30, 1 }
   0xe   : > { %s1887_s17 = scalar_select %p309_p1, %s1767_s27, %s311_s15  }
   0xf   : > { %p1889_p5 = por %p322_p2, %p321_p0  ;;  %p1893_p6 = por %p328_p4, %p327_p3 }
  0x10   : > { %p1462_p7 = scmp.ge.s32.totalorder %s1771_s28, 1  ;;  %p389_p8 = scmp.lt.s32.totalorder %s1771_s28, 3 }
  0x12   : > { %p390_p9 = pnand %p1462_p7, %p389_p8 }
  0x13   : > { %s2133_s1 = sld [smem:[#allocation6_spill]] (!%p390_p9)  ;;  %p432_p10 = scmp.lt.s32.totalorder (!%p390_p9), %s1872_s29, 1 }
  0x14   : > { %393 = sbr.rel (%p390_p9) target bundleno = 2425 (0x979), region = 72  ;;  %s2134_s0 = sld [smem:[#allocation5_spill]] (!%p390_p9) }
  0x15   : > { %s2135_s2 = sld [smem:[#allocation7_spill]] (!%p390_p9)  ;;  %s1775_s23 = smov (!%p390_p9), 104  }
  0x16   : > { %s1778_s15 = smov (!%p390_p9), 96   ;;  %s1779_s16 = smov (!%p390_p9), 64  }
  0x17   : > { %s2136_s3 = sld [smem:[#allocation8_spill]] (!%p390_p9)  ;;  %s1780_s21 = smov (!%p390_p9), [#allocation2]  }
  0x18   : > { %s2137_s4 = sld [smem:[#allocation9_spill]] (!%p390_p9)  ;;  %s1715_s22 = sshll.u32 (!%p390_p9), %s1780_s21, 4  ;;  %s1716_s22 = int_to_ptr.vmem [resolvable:$false] %s1715_s22 }
  0x19   : > { %v1681_v0 = vld [vmem:[%s2133_s1 + $0x8] sm:$0xff]   ;;  %v1773_v1 = vmov 0.0   ;;  %v1682_v2 = vld [vmem:[%s2133_s1] sm:$0xff]   ;;  %vm1774_vm0 = vmmov 0   ;;  %s433_s24 = scalar_select %p432_p10, %s1872_s29, 1  ;;  %vm462_vm1 = vcmask 261120  }
  0x1a   : > { %1535 = vmatprep.subr.bf16.mxu1 %v1773_v1  ;;  %1549 = vmatprep.subr.bf16.mxu0 %v1773_v1  ;;  %vm531_vm2 = vcmask 64512   ;;  %vm778_vm3 = vcmask 1043456   ;;  %vm1311_vm4 = vcmask 523264  }
  0x1b   : > { %1536 = vmatpush3.bf16.msra.mxu1 %v1681_v0  ;;  %1539 = vmatprep.mubr.msk.bf16.mxu1 %vm1774_vm0, %v1773_v1  ;;  %s1464_s30 = sshll.u32 %s433_s24, 3  ;;  %v1465_v5 = vld [vmem:[%s2135_s2] ss:$0 sm:$0xff]  ;;  %s1776_s24 = smov 120  }
  0x1c   : > { %1537 = vmatprep.subr.bf16.mxu1 %v1773_v1  ;;  %1551 = vmatprep.mubr.msk.bf16.mxu0 %vm1774_vm0, %v1773_v1  ;;  %s435_s20 = scalar_lea.vmem %s2134_s0, %s1464_s30  ;;  %s1777_s30 = smov 112  }
  0x1d   : > { %v1918_v3 = vld [vmem:[%s435_s20] sm:$0xff] }
  0x1e   : > { %v438_v4 = vpack.c.bf16 %v1918_v3, %v1918_v3 }
  0x1f   : > { %1538 = vmatpush3.bf16.msra.mxu1 %v1682_v2 }
  0x20   : > { %1543 = vmatprep.subr.bf16.mxu1 %v1773_v1 }
  0x22   : > { %1540 = vmatmul.mubr.msk.bf16.vlgmr.msra.gmra.mxu1 %vm462_vm1, %v438_v4 }
  0x23   : > { %1545 = vmatprep.mubr.msk.bf16.mxu1 %vm1774_vm0, %v1773_v1 }
  0xe2   : > { %v500_v6 = vpop.f32.mrf.mxu1 }
  0xe3   : > { %v501_v7 = vadd.f32 %v1465_v5, %v500_v6 }
  0xe4   : > { %v1541_v8 = vpop.f32.mrf.mxu1 }
  0xe5   : > { %513 = vrot.lane.b32.xlu1 %v501_v7, %s1775_s23  ;;  %507 = vrot.lane.b32.xlu0 %v501_v7, %s1776_s24  ;;  %v1928_v10 = vpack.c.bf16 %v501_v7, %v501_v7  ;;  %v516_v20 = vmul.f32 0.35355338, %v501_v7  ;;  %s1497_s24 = sshll.u32 %s1872_s29, 7  ;;  %s1717_s29 = scalar_lea.vmem %s1716_s22, 256 }
  0xe6   : > { %v503_v9 = vpop.f32.mrf.mxu1 }
  0xe7   : > { %v520_v21 = vpack.c.bf16 %v516_v20, %v516_v20 }
  0xe8   : > { %v1542_v11 = vpop.f32.mrf.mxu1 }
  0xe9   : > { %510 = vrot.lane.b32.xlu0 %v501_v7, %s1777_s30  ;;  %529 = vrot.lane.b32.xlu1 %v1928_v10, %s1778_s15 }
 0x157   : > { %v514_v12 = vpop.permute.xlu1 %513  ;;  %v508_v13 = vpop.permute.xlu0 %507 }
 0x158   : > { %v1931_v14 = vpack.c.bf16 %v508_v13, %v508_v13  ;;  %v1934_v17 = vpack.c.bf16 %v514_v12, %v514_v12  ;;  %v517_v24 = vmul.f32 0.35355338, %v508_v13  ;;  %v519_v31 = vmul.f32 0.35355338, %v514_v12 }
 0x15a   : > { %579 = vrot.lane.b32.xlu0 %v1931_v14, %s1778_s15  ;;  %v521_v28 = vpack.c.bf16 %v517_v24, %v517_v24  ;;  %v523_v33 = vpack.c.bf16 %v519_v31, %v519_v31 }
 0x15b   : > { %v511_v15 = vpop.permute.xlu0 %510  ;;  %v530_v16 = vpop.permute.xlu1 %529 }
 0x15c   : > { %v1936_v18 = vpack.c.bf16 %v511_v15, %v511_v15  ;;  %v536_v19 = vsel %vm531_vm2, %v530_v16, 0  ;;  %v518_v29 = vmul.f32 0.35355338, %v511_v15 }
 0x15d   : > { %1544 = vmatpush3.bf16.xpose.msra.mxu1 %v536_v19 }
 0x15e   : > { %677 = vrot.lane.b32.xlu0 %v1934_v17, %s1778_s15  ;;  %628 = vrot.lane.b32.xlu1 %v1936_v18, %s1778_s15  ;;  %v522_v32 = vpack.c.bf16 %v518_v29, %v518_v29  ;;  %s429_s15 = sand.u32 1, %s1763_s26  }
 0x15f   : > { %1555 = vmatprep.subr.bf16.mxu1 %v1773_v1 }
 0x164   : > { %1546 = vmatmul.mubr.msk.bf16.vlgmr.msra.gmra.mxu1 %vm531_vm2, %v520_v21 }
 0x165   : > { %1557 = vmatprep.mubr.msk.bf16.mxu1 %vm1774_vm0, %v1773_v1 }
 0x1cc   : > { %v580_v22 = vpop.permute.xlu0 %579 }
 0x1cd   : > { %v585_v23 = vsel %vm531_vm2, %v580_v22, 0 }
 0x1ce   : > { %1550 = vmatpush3.bf16.xpose.msra.mxu0 %v585_v23 }
 0x1cf   : > { %1561 = vmatprep.subr.bf16.mxu0 %v1773_v1 }
 0x1d0   : > { %v629_v25 = vpop.permute.xlu1 %628  ;;  %v678_v27 = vpop.permute.xlu0 %677 }
 0x1d1   : > { %v634_v26 = vsel %vm531_vm2, %v629_v25, 0  ;;  %v683_v30 = vsel %vm531_vm2, %v678_v27, 0 }
 0x1d2   : > { %1556 = vmatpush3.bf16.xpose.msra.mxu1 %v634_v26 }
 0x1d3   : > { %1567 = vmatprep.subr.bf16.mxu1 %v1773_v1 }
 0x1d5   : > { %1552 = vmatmul.mubr.msk.bf16.vlgmr.msra.gmra.mxu0 %vm531_vm2, %v521_v28 }
 0x1d6   : > { %1562 = vmatpush3.bf16.xpose.msra.mxu0 %v683_v30  ;;  %1563 = vmatprep.mubr.msk.bf16.mxu0 %vm1774_vm0, %v1773_v1  ;;  %v967_v30 = vld [vmem:[%s2136_s3 + $0x4] sm:$0xf] }
 0x1d7   : > { %1573 = vmatprep.subr.bf16.mxu0 %v1773_v1 }
 0x1d9   : > { %1558 = vmatmul.mubr.msk.bf16.vlgmr.msra.gmra.mxu1 %vm531_vm2, %v522_v32 }
 0x1da   : > { %1569 = vmatprep.mubr.msk.bf16.mxu1 %vm1774_vm0, %v1773_v1 }
 0x1dd   : > { %1564 = vmatmul.mubr.msk.bf16.vlgmr.msra.gmra.mxu0 %vm531_vm2, %v523_v33 }
 0x1de   : > { %1575 = vmatprep.mubr.msk.bf16.mxu0 %vm1774_vm0, %v1773_v1 }
 0x224   : > { %v572_v34 = vpop.f32.mrf.mxu1 }
 0x225   : > { %v725_v35 = vsel %vm531_vm2, %v572_v34, -inf }
 0x226   : > { %726 = vmax.xlane.f32.xlu1 %v725_v35  ;;  %v1547_v36 = vpop.f32.mrf.mxu1 }
 0x227   : > { %v966_v36 = vld [vmem:[%s2136_s3] sm:$0xf] }
 0x228   : > { %v575_v37 = vpop.f32.mrf.mxu1 }
 0x22a   : > { %v1548_v38 = vpop.f32.mrf.mxu1 }
 0x295   : > { %v621_v39 = vpop.f32.mrf.mxu0 }
 0x296   : > { %v728_v40 = vsel %vm531_vm2, %v621_v39, -inf }
 0x297   : > { %729 = vmax.xlane.f32.xlu0 %v728_v40  ;;  %v1553_v41 = vpop.f32.mrf.mxu0  ;;  %v969_v40 = vld [vmem:[%s2136_s3 + $0xc] sm:$0xf] }
 0x299   : > { %v624_v42 = vpop.f32.mrf.mxu0  ;;  %v670_v43 = vpop.f32.mrf.mxu1 }
 0x29a   : > { %v731_v44 = vsel %vm531_vm2, %v670_v43, -inf }
 0x29b   : > { %v1554_v45 = vpop.f32.mrf.mxu0  ;;  %732 = vmax.xlane.f32.xlu0 %v731_v44  ;;  %v1559_v46 = vpop.f32.mrf.mxu1 }
 0x29d   : > { %v673_v47 = vpop.f32.mrf.mxu1  ;;  %v719_v48 = vpop.f32.mrf.mxu0 }
 0x29e   : > { %v734_v49 = vsel %vm531_vm2, %v719_v48, -inf  ;;  %v968_v47 = vld [vmem:[%s2136_s3 + $0x8] sm:$0xf]  ;;  %s1398_s3 = scalar_lea.hbm %s2125_s13, %s1497_s24 }
 0x29f   : > { %v1565_v50 = vpop.f32.mrf.mxu0  ;;  %735 = vmax.xlane.f32.xlu1 %v734_v49  ;;  %v1560_v51 = vpop.f32.mrf.mxu1 }
 0x2a0   : > { %v1069_v50 = vsel %vm778_vm3, %v968_v47, 0 }
 0x2a1   : > { %v722_v52 = vpop.f32.mrf.mxu0 }
 0x2a3   : > { %v1566_v53 = vpop.f32.mrf.mxu0 }
 0x2af   : > { %v727_v54 = vpop.xlane.xlu1 %726 }
 0x2b0   : > { %v737_v55 = vsub.f32 %v572_v34, %v727_v54  ;;  %822 = vrot.lane.b32.xlu1 %v1931_v14, %s1779_s16  ;;  %v976_v34 = vsel %vm778_vm3, %v967_v30, 0  ;;  %v1683_v30 = vld [vmem:[%s2119_s7 + $0x8] sm:$0xff]  }
 0x2b2   : > { %v741_v56 = vmul.f32 1.442695, %v737_v55 }
 0x2b4   : > { %1689 = vpow2.f32 %v741_v56 }
 0x2c1   : > { %v1690_v57 = vpop.eup %1689 }
 0x2c2   : > { %v749_v58 = vsel %vm531_vm2, %v1690_v57, 0.0 }
 0x2c3   : > { %750 = vadd.xlane.f32.xlu0 %v749_v58 }
 0x2d9   : > { %773 = vrot.lane.b32.xlu0 %v1928_v10, %s1779_s16 }
 0x320   : > { %v730_v59 = vpop.xlane.xlu0 %729 }
 0x321   : > { %v738_v60 = vsub.f32 %v621_v39, %v730_v59  ;;  %v1022_v39 = vsel %vm778_vm3, %v966_v36, 0 }
 0x323   : > { %v743_v61 = vmul.f32 1.442695, %v738_v60 }
 0x324   : > { %v733_v62 = vpop.xlane.xlu0 %732 }
 0x325   : > { %1691 = vpow2.f32 %v743_v61  ;;  %v739_v63 = vsub.f32 %v670_v43, %v733_v62  ;;  %v1117_v43 = vsel %vm778_vm3, %v969_v40, 0 }
 0x327   : > { %v745_v0 = vmul.f32 1.442695, %v739_v63 }
 0x328   : > { %v736_v2 = vpop.xlane.xlu1 %735 }
 0x329   : > { %1693 = vpow2.f32 %v745_v0  ;;  %v740_v4 = vsub.f32 %v719_v48, %v736_v2 }
 0x32b   : > { %v747_v5 = vmul.f32 1.442695, %v740_v4 }
 0x32c   : > { %v823_v6 = vpop.permute.xlu1 %822 }
 0x32d   : > { %1695 = vpow2.f32 %v747_v5  ;;  %v828_v7 = vsel %vm778_vm3, %v823_v6, 0 }
 0x32e   : > { %1574 = vmatpush3.bf16.msra.mxu0 %v828_v7 }
 0x32f   : > { %1585 = vmatprep.subr.bf16.mxu0 %v1773_v1 }
 0x332   : > { %v1692_v8 = vpop.eup %1691 }
 0x333   : > { %v752_v9 = vsel %vm531_vm2, %v1692_v8, 0.0 }
 0x334   : > { %753 = vadd.xlane.f32.xlu1 %v752_v9 }
 0x336   : > { %v1694_v10 = vpop.eup %1693 }
 0x337   : > { %v755_v11 = vsel %vm531_vm2, %v1694_v10, 0.0 }
 0x338   : > { %756 = vadd.xlane.f32.xlu0 %v755_v11 }
 0x33a   : > { %v1696_v12 = vpop.eup %1695 }
 0x33b   : > { %v758_v13 = vsel %vm531_vm2, %v1696_v12, 0.0 }
 0x33c   : > { %759 = vadd.xlane.f32.xlu1 %v758_v13 }
 0x34c   : > { %v751_v14 = vpop.xlane.xlu0 %750 }
 0x34d   : > { %1697 = vrcp.f32 %v751_v14  ;;  %870 = vrot.lane.b32.xlu1 %v1936_v18, %s1779_s16  ;;  %v1481_v14 = vld [vmem:[%s2137_s4] ss:$0 sm:$0xff]  ;;  %s1387_s4 = scalar_lea.sflag [#allocation3], %s429_s15 }
 0x34e   : > { %918 = vrot.lane.b32.xlu0 %v1934_v17, %s1779_s16  ;;  %s1463_s16 = sshll.u32 %s429_s15, 3 }
 0x34f   : > { %s431_s30 = scalar_lea.vmem [#allocation2], %s1463_s16 }
 0x350   : > { %v774_v15 = vpop.permute.xlu0 %773  ;;  %s1400_s0 = sshll.u32 %s431_s30, 4  ;;  %s1401_s0 = int_to_ptr.vmem [resolvable:$true] %s1400_s0 }
 0x351   : > { %v780_v16 = vsel %vm778_vm3, %v774_v15, 0  ;;  %s1711_s20 = scalar_lea.vmem %s1401_s0, 128  ;;  %p1718_p0 = scmp.lt.s32.totalorder %s1401_s0, %s1716_s22 }
 0x352   : > { %1568 = vmatpush3.bf16.msra.mxu1 %v780_v16  ;;  %p1712_p11 = scmp.ne.s32.totalorder %s1401_s0, %s1711_s20  ;;  %p1719_p1 = scmp.lt.s32.totalorder %s1717_s29, %s1711_s20 }
 0x353   : > { %1579 = vmatprep.subr.bf16.mxu1 %v1773_v1 }
 0x354   : > { %p1713_p12 = pnand %p1712_p11, %p1889_p5  ;;  %p1720_p2 = por %p1719_p1, %p1718_p0 }
 0x356   : > { %p1714_p13 = pneg %p1713_p12 }
 0x358   : > { %p1721_p3 = pnand %p1720_p2, %p1714_p13 }
 0x35a   : > { %v1698_v19 = vpop.eup %1697 }
 0x35b   : > { %v762_v20 = vmul.f32 %v1698_v19, %v1690_v57 }
 0x35d   : > { %v769_v21 = vpack.c.bf16 %v762_v20, %v762_v20 }
 0x35f   : > { %1570 = vmatmul.mubr.msk.bf16.vlgmr.msra.gmra.mxu1 %vm531_vm2, %v769_v21 }
 0x360   : > { %1581 = vmatprep.mubr.msk.bf16.mxu1 %vm1774_vm0, %v1773_v1 }
 0x3bd   : > { %v754_v22 = vpop.xlane.xlu1 %753 }
 0x3be   : > { %1699 = vrcp.f32 %v754_v22 }
 0x3c1   : > { %v757_v18 = vpop.xlane.xlu0 %756 }
 0x3c2   : > { %1701 = vrcp.f32 %v757_v18 }
 0x3c5   : > { %v760_v23 = vpop.xlane.xlu1 %759  ;;  %v919_v27 = vpop.permute.xlu0 %918 }
 0x3c6   : > { %1703 = vrcp.f32 %v760_v23  ;;  %v924_v31 = vsel %vm778_vm3, %v919_v27, 0 }
 0x3c9   : > { %v871_v17 = vpop.permute.xlu1 %870 }
 0x3ca   : > { %v876_v24 = vsel %vm778_vm3, %v871_v17, 0 }
 0x3cb   : > { %v1700_v25 = vpop.eup %1699  ;;  %1580 = vmatpush3.bf16.msra.mxu1 %v876_v24 }
 0x3cc   : > { %v764_v26 = vmul.f32 %v1700_v25, %v1692_v8  ;;  %1591 = vmatprep.subr.bf16.mxu1 %v1773_v1 }
 0x3ce   : > { %v770_v28 = vpack.c.bf16 %v764_v26, %v764_v26 }
 0x3cf   : > { %v1702_v29 = vpop.eup %1701 }
 0x3d0   : > { %1576 = vmatmul.mubr.msk.bf16.vlgmr.msra.gmra.mxu0 %vm531_vm2, %v770_v28  ;;  %v766_v32 = vmul.f32 %v1702_v29, %v1694_v10 }
 0x3d1   : > { %1586 = vmatpush3.bf16.msra.mxu0 %v924_v31  ;;  %1587 = vmatprep.mubr.msk.bf16.mxu0 %vm1774_vm0, %v1773_v1  ;;  %v1684_v31 = vld [vmem:[%s2119_s7] sm:$0xff]  }
 0x3d2   : > { %v771_v33 = vpack.c.bf16 %v766_v32, %v766_v32  ;;  %1597 = vmatprep.subr.bf16.mxu0 %v1773_v1 }
 0x3d3   : > { %v1704_v35 = vpop.eup %1703 }
 0x3d4   : > { %1582 = vmatmul.mubr.msk.bf16.vlgmr.msra.gmra.mxu1 %vm531_vm2, %v771_v33  ;;  %v768_v37 = vmul.f32 %v1704_v35, %v1696_v12  ;;  %v1482_v35 = vld [vmem:[%s2117_s5] ss:$0 sm:$0xff] }
 0x3d5   : > { %1592 = vmatpush3.bf16.msra.mxu1 %v976_v34  ;;  %1593 = vmatprep.mubr.msk.bf16.mxu1 %vm1774_vm0, %v1773_v1 }
 0x3d6   : > { %v772_v38 = vpack.c.bf16 %v768_v37, %v768_v37  ;;  %1603 = vmatprep.subr.bf16.mxu1 %v1773_v1  ;;  %v1483_v37 = vld [vmem:[%s2118_s6] ss:$0 sm:$0xff] }
 0x3d8   : > { %1588 = vmatmul.mubr.msk.bf16.vlgmr.msra.gmra.mxu0 %vm531_vm2, %v772_v38 }
 0x3d9   : > { %1598 = vmatpush3.bf16.msra.mxu0 %v1022_v39  ;;  %1599 = vmatprep.mubr.msk.bf16.mxu0 %vm1774_vm0, %v1773_v1 }
 0x3da   : > { %1609 = vmatprep.subr.bf16.mxu0 %v1773_v1 }
 0x41f   : > { %v816_v41 = vpop.f32.mrf.mxu1 }
 0x420   : > { %v970_v42 = vpack.c.bf16 %v816_v41, %v816_v41  ;;  %v1685_v41 = vld [vmem:[%s2121_s9 + $0x18] sm:$0xff]  }
 0x421   : > { %v1571_v44 = vpop.f32.mrf.mxu1 }
 0x422   : > { %1600 = vmatmul.mubr.msk.bf16.vlgmr.msra.gmra.mxu0 %vm531_vm2, %v970_v42  ;;  %v1686_v42 = vld [vmem:[%s2121_s9 + $0x10] sm:$0xff]   ;;  %v1688_v44 = vld [vmem:[%s2121_s9] sm:$0xff]  }
 0x423   : > { %v819_v45 = vpop.f32.mrf.mxu1  ;;  %1610 = vmatpush3.bf16.msra.mxu0 %v1117_v43  ;;  %1611 = vmatprep.mubr.msk.bf16.mxu0 %vm1774_vm0, %v1773_v1  ;;  %v1687_v43 = vld [vmem:[%s2121_s9 + $0x8] sm:$0xff]  }
 0x424   : > { %1623 = vmatprep.subr.bf16.mxu0 %v1773_v1  ;;  %v1484_v45 = vld [vmem:[%s2120_s8] ss:$0 sm:$0xff] }
 0x425   : > { %v1572_v46 = vpop.f32.mrf.mxu1 }
 0x490   : > { %v864_v48 = vpop.f32.mrf.mxu0 }
 0x491   : > { %v971_v49 = vpack.c.bf16 %v864_v48, %v864_v48 }
 0x492   : > { %v1577_v51 = vpop.f32.mrf.mxu0 }
 0x493   : > { %1594 = vmatmul.mubr.msk.bf16.vlgmr.msra.gmra.mxu1 %vm531_vm2, %v971_v49 }
 0x494   : > { %1604 = vmatpush3.bf16.msra.mxu1 %v1069_v50  ;;  %v867_v52 = vpop.f32.mrf.mxu0  ;;  %v912_v53 = vpop.f32.mrf.mxu1  ;;  %1605 = vmatprep.mubr.msk.bf16.mxu1 %vm1774_vm0, %v1773_v1 }
 0x495   : > { %1615 = vmatprep.subr.bf16.mxu1 %v1773_v1  ;;  %v1064_v58 = vpack.c.bf16 %v912_v53, %v912_v53 }
 0x496   : > { %v1578_v54 = vpop.f32.mrf.mxu0  ;;  %v1583_v55 = vpop.f32.mrf.mxu1 }
 0x498   : > { %v915_v56 = vpop.f32.mrf.mxu1  ;;  %v960_v57 = vpop.f32.mrf.mxu0 }
 0x499   : > { %v1112_v59 = vpack.c.bf16 %v960_v57, %v960_v57  ;;  %v1488_v56 = vld [vmem:[%s2122_s10] ss:$0 sm:$0xff] }
 0x49a   : > { %v1584_v60 = vpop.f32.mrf.mxu1  ;;  %v1589_v61 = vpop.f32.mrf.mxu0 }
 0x49b   : > { %1606 = vmatmul.mubr.msk.bf16.vlgmr.msra.gmra.mxu1 %vm531_vm2, %v1064_v58  ;;  %1612 = vmatmul.mubr.msk.bf16.vlgmr.msra.gmra.mxu0 %vm531_vm2, %v1112_v59 }
 0x49c   : > { %v963_v62 = vpop.f32.mrf.mxu0  ;;  %1619 = vmatprep.mubr.msk.bf16.mxu1 %vm1774_vm0, %v1773_v1  ;;  %1631 = vmatprep.mubr.msk.bf16.mxu0 %vm1774_vm0, %v1773_v1 }
 0x49d   : > { %1616 = vmatpush3.bf16.msra.mxu1 %v1683_v30  ;;  %1624 = vmatpush3.bf16.msra.mxu0 %v1685_v41 }
 0x49e   : > { %v1590_v63 = vpop.f32.mrf.mxu0  ;;  %1617 = vmatprep.subr.bf16.mxu1 %v1773_v1  ;;  %1625 = vmatprep.subr.bf16.mxu0 %v1773_v1 }
 0x4a1   : > { %1618 = vmatpush3.bf16.msra.mxu1 %v1684_v31  ;;  %1626 = vmatpush3.bf16.msra.mxu0 %v1686_v42 }
 0x4a2   : > { %1627 = vmatprep.subr.bf16.mxu0 %v1773_v1 }
 0x4a5   : > { %1628 = vmatpush3.bf16.msra.mxu0 %v1687_v43 }
 0x4a6   : > { %1629 = vmatprep.subr.bf16.mxu0 %v1773_v1 }
 0x4a9   : > { %1630 = vmatpush3.bf16.msra.mxu0 %v1688_v44 }
 0x4e2   : > { %v1058_v0 = vpop.f32.mrf.mxu0 }
 0x4e4   : > { %v1601_v2 = vpop.f32.mrf.mxu0 }
 0x4e6   : > { %v1061_v4 = vpop.f32.mrf.mxu0 }
 0x4e8   : > { %v1602_v5 = vpop.f32.mrf.mxu0 }
 0x553   : > { %v1012_v6 = vpop.f32.mrf.mxu1 }
 0x554   : > { %v1059_v10 = vadd.f32 %v1058_v0, %v1012_v6 }
 0x555   : > { %v1595_v7 = vpop.f32.mrf.mxu1 }
 0x557   : > { %v1015_v8 = vpop.f32.mrf.mxu1 }
 0x559   : > { %v1596_v9 = vpop.f32.mrf.mxu1 }
 0x55b   : > { %v1105_v11 = vpop.f32.mrf.mxu1  ;;  %v1153_v12 = vpop.f32.mrf.mxu0 }
 0x55c   : > { %v1111_v13 = vadd.f32 %v1105_v11, %v1059_v10  ;;  %v1494_v11 = vld [vmem:[%s2123_s11] ss:$0 sm:$0xff] }
 0x55d   : > { %v1607_v15 = vpop.f32.mrf.mxu1  ;;  %v1613_v16 = vpop.f32.mrf.mxu0 }
 0x55e   : > { %v1159_v19 = vadd.f32 %v1153_v12, %v1111_v13  ;;  %v1495_v13 = vld [vmem:[%s2124_s12] ss:$0 sm:$0xff] }
 0x55f   : > { %v1108_v20 = vpop.f32.mrf.mxu1  ;;  %v1156_v21 = vpop.f32.mrf.mxu0 }
 0x560   : > { %v1167_v22 = vadd.f32 %v1481_v14, %v1159_v19 }
 0x561   : > { %v1608_v18 = vpop.f32.mrf.mxu1  ;;  %v1614_v23 = vpop.f32.mrf.mxu0 }
 0x562   : > { %v1168_v17 = vadd.f32 %v1167_v22, %v1918_v3 }
 0x564   : > { %v1171_v24 = vsel %vm462_vm1, %v1168_v17, 0.0 }
 0x565   : > { %1172 = vadd.xlane.f32.xlu1 %v1171_v24 }
 0x5ee   : > { %v1173_v25 = vpop.xlane.xlu1 %1172 }
 0x5ef   : > { %v1175_v26 = vmul.f32 0.03125, %v1173_v25 }
 0x5f1   : > { %v1176_v27 = vsub.f32 %v1168_v17, %v1175_v26 }
 0x5f3   : > { %v1177_v28 = vmul.f32 %v1176_v27, %v1176_v27 }
 0x5f5   : > { %v1178_v29 = vsel %vm462_vm1, %v1177_v28, 0.0 }
 0x5f6   : > { %1179 = vadd.xlane.f32.xlu0 %v1178_v29 }
 0x67f   : > { %v1180_v3 = vpop.xlane.xlu0 %1179 }
 0x680   : > { %v1181_v32 = vmul.f32 0.03125, %v1180_v3 }
 0x682   : > { %v1182_v33 = vadd.f32 1e-12, %v1181_v32 }
 0x684   : > { %1705 = vrsqrt.f32 %v1182_v33 }
 0x691   : > { %v1706_v34 = vpop.eup %1705 }
 0x692   : > { %v1184_v36 = vmul.f32 %v1706_v34, %v1176_v27 }
 0x694   : > { %v1191_v38 = vmul.f32 %v1482_v35, %v1184_v36 }
 0x696   : > { %v1198_v39 = vadd.f32 %v1483_v37, %v1191_v38 }
 0x698   : > { %v1199_v40 = vpack.c.bf16 %v1198_v39, %v1198_v39 }
 0x69a   : > { %1620 = vmatmul.mubr.msk.bf16.vlgmr.msra.gmra.mxu1 %vm462_vm1, %v1199_v40 }
 0x75a   : > { %v1260_v46 = vpop.f32.mrf.mxu1 }
 0x75b   : > { %v1261_v47 = vadd.f32 %v1484_v45, %v1260_v46 }
 0x75c   : > { %v1621_v48 = vpop.f32.mrf.mxu1 }
 0x75d   : > { %v1267_v49 = vmul.f32 0.70710677, %v1261_v47  ;;  %v1266_v53 = vmul.f32 0.5, %v1261_v47 }
 0x75e   : > { %v1263_v50 = vpop.f32.mrf.mxu1 }
 0x75f   : > { %1707 = verf.f32 %v1267_v49 }
 0x760   : > { %v1622_v51 = vpop.f32.mrf.mxu1 }
 0x76c   : > { %v1708_v52 = vpop.eup %1707 }
 0x76d   : > { %v1269_v54 = vadd.f32 1.0, %v1708_v52 }
 0x76f   : > { %v1270_v1 = vmul.f32 %v1269_v54, %v1266_v53 }
 0x771   : > { %v1271_v55 = vpack.c.bf16 %v1270_v1, %v1270_v1 }
 0x773   : > { %1632 = vmatmul.mubr.msk.bf16.vlgmr.msra.gmra.mxu0 %vm1311_vm4, %v1271_v55 }
 0x833   : > { %v1349_v57 = vpop.f32.mrf.mxu0 }
 0x834   : > { %v1350_v58 = vadd.f32 %v1488_v56, %v1349_v57 }
 0x835   : > { %v1633_v59 = vpop.f32.mrf.mxu0 }
 0x836   : > { %v1355_v60 = vadd.f32 %v1350_v58, %v1198_v39 }
 0x837   : > { %v1352_v61 = vpop.f32.mrf.mxu0 }
 0x838   : > { %v1358_v62 = vsel %vm462_vm1, %v1355_v60, 0.0 }
 0x839   : > { %1359 = vadd.xlane.f32.xlu0 %v1358_v62  ;;  %v1634_v63 = vpop.f32.mrf.mxu0 }
 0x8c2   : > { %v1360_v0 = vpop.xlane.xlu0 %1359 }
 0x8c3   : > { %v1361_v2 = vmul.f32 0.03125, %v1360_v0 }
 0x8c5   : > { %v1362_v4 = vsub.f32 %v1355_v60, %v1361_v2 }
 0x8c7   : > { %v1363_v5 = vmul.f32 %v1362_v4, %v1362_v4 }
 0x8c9   : > { %v1364_v6 = vsel %vm462_vm1, %v1363_v5, 0.0 }
 0x8ca   : > { %1365 = vadd.xlane.f32.xlu1 %v1364_v6 }
 0x953   : > { %v1366_v7 = vpop.xlane.xlu1 %1365 }
 0x954   : > { %v1367_v8 = vmul.f32 0.03125, %v1366_v7 }
 0x956   : > { %v1368_v9 = vadd.f32 1e-12, %v1367_v8 }
 0x958   : > { %1709 = vrsqrt.f32 %v1368_v9 }
 0x965   : > { %v1710_v10 = vpop.eup %1709 }
 0x966   : > { %v1370_v12 = vmul.f32 %v1710_v10, %v1362_v4 }
 0x968   : > { %v1377_v14 = vmul.f32 %v1494_v11, %v1370_v12 }
 0x96a   : > { %v1384_v15 = vadd.f32 %v1495_v13, %v1377_v14 }
 0x96c   : > { %1385 = vst.msk [vmem:[%s431_s30] sm:$0xff] %vm462_vm1, %v1384_v15 }
 0x96d   : > { %1724 = shalt.err (!%p1721_p3)
}
 0x96e   : > { %s1725_s1 = scalar_lea.hbm %s1398_s3, 128  ;;  %s1729_s16 = scalar_lea.hbm %s2125_s13, 256 }
 0x96f   : > { %p1726_p4 = scmp.ne.s32.totalorder %s1398_s3, %s1725_s1  ;;  %p1730_p9 = scmp.lt.s32.totalorder %s1398_s3, %s2125_s13 }
 0x970   : > { %p1731_p10 = scmp.lt.s32.totalorder %s1729_s16, %s1725_s1 }
 0x971   : > { %p1727_p7 = pnand %p1726_p4, %p1889_p5 }
 0x972   : > { %p1732_p11 = por %p1731_p10, %p1730_p9 }
 0x973   : > { %p1728_p8 = pneg %p1727_p7 }
 0x975   : > { %p1733_p12 = pnand %p1732_p11, %p1728_p8 }
 0x977   : > { %1736 = shalt.err (!%p1733_p12)
}
 0x978   : > { %1635 = dma.vmem_to_hbm [thread:$0]  (%p1889_p5), %s1401_s0, 128, %s1398_s3, %s1387_s4  }
 0x979 PF: > { %p1641_p13 = scmp.ge.s32.totalorder %s1771_s28, 2  ;;  %s1412_s30 = sand.u32 1, %s1759_s25  }
 0x97a   : > { %s1413_s20 = scalar_lea.sflag [#allocation3], %s1412_s30 }
 0x97b   : > { %p1638_p0 = pnand %p1641_p13, %p1893_p6 }
 0x97d   : > { %p1639_p1 = pneg %p1638_p0 }
 0x97f   : > { %1754 = dma.done.wait (%p1639_p1), %s1413_s20, 128  }
 0x980   : > { %1756 = vsyncadd (%p1639_p1), %s1413_s20, 4294967168  ;;  %p23_p2 = scmp.ge.s32.totalorder %s1876_s14, 4   ;;  %s2138_s25 = smov %s1763_s26 }
 0x981   : > { %s2139_s26 = smov %s1767_s27  ;;  %s2140_s27 = smov %s1887_s17 }
 0x982   : > { %s2141_s28 = smov %s1876_s14  ;;  %25 = sbr.rel (!%p23_p2) target bundleno = 9 (0x9), region = 107 }
 0x987   :  { %1418 = vsyncpa [#allocation3], 1 }
 0x988   :  { %1420 = vsyncpa [#allocation3 + $0x1], 1 }

</bundles_post_ra>
